<compile_context>
chip_gen: v6e
topology: v6e:2x2x1
jax: 0.10.0
libtpu: 0.0.40
codegen_flags: <defaults>
</compile_context>

<pallas_src>
import functools
import math

import jax
import jax.numpy as jnp
from jax.experimental import pallas as pl
from jax.experimental.pallas import tpu as pltpu


def _self_attention_kernel(v_ref, k_ref, q_ref,
                           wv_ref, wk_ref, wq_ref, wfc_ref, bfc_ref,
                           o_ref, *, heads):
    f32 = jnp.float32
    bt, Lq, E = q_ref.shape
    Lk = k_ref.shape[1]
    Lv = v_ref.shape[1]
    D = E // heads
    cdt = q_ref.dtype            # MXU operand dtype (bf16 stays bf16, f32 stays f32)

    # ---- Q/K/V projections: one MXU-shaped matmul each over the whole batch tile.
    #      Weights arrive pre-transposed as (in, out), so y = x @ W (no transpose).
    q2 = q_ref[...].reshape(bt * Lq, E)
    k2 = k_ref[...].reshape(bt * Lk, E)
    v2 = v_ref[...].reshape(bt * Lv, E)

    q_proj = jnp.dot(q2, wq_ref[...], preferred_element_type=f32)   # (bt*Lq, E)
    k_proj = jnp.dot(k2, wk_ref[...], preferred_element_type=f32)   # (bt*Lk, E)
    v_proj = jnp.dot(v2, wv_ref[...], preferred_element_type=f32)   # (bt*Lv, E)

    # Fold the 1/sqrt(D) scale into Q (O(Lq*E) work instead of O(Lq*Lk) per head).
    inv_sqrt_d = 1.0 / math.sqrt(D)
    q_c = (q_proj * inv_sqrt_d).astype(cdt).reshape(bt, Lq, E)
    k_c = k_proj.astype(cdt).reshape(bt, Lk, E)
    v_c = v_proj.astype(cdt).reshape(bt, Lv, E)

    # fc_out is accumulated head-by-head: no head concatenate, and every
    # accumulation matmul has a full-E (lane-dense) output.
    acc = jnp.zeros((bt * Lq, E), dtype=f32)
    for h in range(heads):
        sl = slice(h * D, (h + 1) * D)
        qh = q_c[:, :, sl]       # (bt, Lq, D)
        kh = k_c[:, :, sl]       # (bt, Lk, D)
        vh = v_c[:, :, sl]       # (bt, Lv, D)

        # Scores batched over the batch tile, contracting the trailing dim
        # (no materialized K transpose).
        s = jnp.einsum('bqd,bkd->bqk', qh, kh, preferred_element_type=f32)

        # Numerically-stable softmax, kept in f32.  Normalization is deferred
        # to after the P@V matmul.
        # TODO(synk): optional `mask` argument of the PyTorch forward is not
        # implemented (mask=None path only).
        s_max = jnp.max(s, axis=-1, keepdims=True)
        p = jnp.exp(s - s_max)
        l = jnp.sum(p, axis=-1, keepdims=True)                       # (bt, Lq, 1)

        o_h = jnp.einsum('bqk,bkd->bqd', p.astype(cdt), vh,
                         preferred_element_type=f32)                 # (bt, Lq, D)
        o_h = o_h * pl.reciprocal(l, approx=False)

        # This head's contribution to fc_out: (bt*Lq, D) @ (D, E).
        wfc_h = wfc_ref[sl, :]                                       # (D, E)
        acc = acc + jnp.dot(o_h.astype(cdt).reshape(bt * Lq, D), wfc_h,
                            preferred_element_type=f32)

    out = acc + bfc_ref[...].astype(f32)                             # (bt*Lq, E)
    o_ref[...] = out.reshape(bt, Lq, E).astype(o_ref.dtype)


def self_attention_pallas(values, keys, query, wv, wk, wq, wfc, bfc,
                          *, heads, b_tile=None):
    N, Lq, E = query.shape
    Lv = values.shape[1]
    Lk = keys.shape[1]

    # Choose a batch tile: aim for MXU-shaped row counts (~512 rows per step)
    # while keeping >= 2 grid steps when possible (dual-TensorCore chips).
    if b_tile is None:
        target_rows = 512
        bt = max(1, target_rows // max(Lq, 1))
        if N >= 2:
            bt = min(bt, (N + 1) // 2)
        bt = max(1, min(bt, N))
    else:
        bt = max(1, min(b_tile, N))

    n_steps = (N + bt - 1) // bt
    n_pad = n_steps * bt
    if n_pad != N:
        pad = ((0, n_pad - N), (0, 0), (0, 0))
        values = jnp.pad(values, pad)
        keys = jnp.pad(keys, pad)
        query = jnp.pad(query, pad)

    # Pre-transpose the weights ONCE (host/XLA side): (out, in) -> (in, out).
    wv_t, wk_t, wq_t, wfc_t = wv.T, wk.T, wq.T, wfc.T
    bfc2 = bfc.reshape(1, E)

    # Rough VMEM budget: double-buffered activation blocks + weights + f32 temps.
    itemsize = jnp.dtype(query.dtype).itemsize
    block_bytes = bt * (Lv + Lk + 2 * Lq) * E * itemsize
    weight_bytes = (4 * E * E + E) * jnp.dtype(wv.dtype).itemsize
    temp_bytes = 4 * bt * (Lq + Lk + Lv) * E + 4 * bt * Lq * max(Lk, E)
    vmem_limit = int(min(64 * 1024 * 1024,
                         max(16 * 1024 * 1024,
                             4 * (2 * block_bytes + weight_bytes + temp_bytes))))

    kernel = functools.partial(_self_attention_kernel, heads=heads)
    out = pl.pallas_call(
        kernel,
        out_shape=jax.ShapeDtypeStruct((n_pad, Lq, E), query.dtype),
        grid=(n_steps,),
        in_specs=[
            pl.BlockSpec((bt, Lv, E), lambda n: (n, 0, 0)),
            pl.BlockSpec((bt, Lk, E), lambda n: (n, 0, 0)),
            pl.BlockSpec((bt, Lq, E), lambda n: (n, 0, 0)),
            pl.BlockSpec((E, E), lambda n: (0, 0)),
            pl.BlockSpec((E, E), lambda n: (0, 0)),
            pl.BlockSpec((E, E), lambda n: (0, 0)),
            pl.BlockSpec((E, E), lambda n: (0, 0)),
            pl.BlockSpec((1, E), lambda n: (0, 0)),
        ],
        out_specs=pl.BlockSpec((bt, Lq, E), lambda n: (n, 0, 0)),
        compiler_params=pltpu.CompilerParams(
            dimension_semantics=("parallel",),
            vmem_limit_bytes=vmem_limit,
        ),
    )(values, keys, query, wv_t, wk_t, wq_t, wfc_t, bfc2)

    return out[:N] if n_pad != N else out


def self_attention_ref(values, keys, query, wv, wk, wq, wfc, bfc, *, heads):
    """Pure-JAX reference mirroring the PyTorch forward (mask=None)."""
    N, Lq, E = query.shape
    D = E // heads
    v = values @ wv.T
    k = keys @ wk.T
    q = query @ wq.T
    v = v.reshape(N, -1, heads, D)
    k = k.reshape(N, -1, heads, D)
    q = q.reshape(N, Lq, heads, D)
    score = jnp.einsum('nqhd,nkhd->nhqk', q, k)
    attn = jax.nn.softmax(score / math.sqrt(D), axis=-1)
    out = jnp.einsum('nhql,nlhd->nqhd', attn, v).reshape(N, Lq, E)
    return out @ wfc.T + bfc


if __name__ == "__main__":
    # Small shapes consistent with the module: batch=2, seq=8, embed=32, heads=4
    N, L, E, H = 2, 8, 32, 4

    key = jax.random.PRNGKey(0)
    ks = jax.random.split(key, 8)

    values = jax.random.normal(ks[0], (N, L, E), jnp.float32)
    keys_x = jax.random.normal(ks[1], (N, L, E), jnp.float32)
    query = jax.random.normal(ks[2], (N, L, E), jnp.float32)

    # Deterministic parameter init (PyTorch Linear weight layout: (out, in)).
    scale = 1.0 / math.sqrt(E)
    wv = jax.random.uniform(ks[3], (E, E), jnp.float32, -scale, scale)
    wk = jax.random.uniform(ks[4], (E, E), jnp.float32, -scale, scale)
    wq = jax.random.uniform(ks[5], (E, E), jnp.float32, -scale, scale)
    wfc = jax.random.uniform(ks[6], (E, E), jnp.float32, -scale, scale)
    bfc = jax.random.uniform(ks[7], (E,), jnp.float32, -scale, scale)

    out = self_attention_pallas(values, keys_x, query, wv, wk, wq, wfc, bfc,
                                heads=H)
    out = jax.block_until_ready(out)

    ref = self_attention_ref(values, keys_x, query, wv, wk, wq, wfc, bfc,
                             heads=H)
    assert out.shape == (N, L, E)
    assert jnp.allclose(out, ref, atol=1e-4, rtol=1e-4), "mismatch vs reference"

    print("KERNEL_OK")
</pallas_src>

<mosaic_0001>
module attributes {stable_mosaic.version = 11 : i64} {
  func.func @_self_attention_kernel(%arg0: i32, %arg1: memref<1x8x32xf32, #tpu.memory_space<vmem>>, %arg2: memref<1x8x32xf32, #tpu.memory_space<vmem>>, %arg3: memref<1x8x32xf32, #tpu.memory_space<vmem>>, %arg4: memref<32x32xf32, #tpu.memory_space<vmem>>, %arg5: memref<32x32xf32, #tpu.memory_space<vmem>>, %arg6: memref<32x32xf32, #tpu.memory_space<vmem>>, %arg7: memref<32x32xf32, #tpu.memory_space<vmem>>, %arg8: memref<1x32xf32, #tpu.memory_space<vmem>>, %arg9: memref<1x8x32xf32, #tpu.memory_space<vmem>>) attributes {dimension_semantics = [#tpu.dimension_semantics<parallel>], iteration_bounds = array<i64: 2>, scalar_prefetch = 0 : i64, scratch_operands = 0 : i64, tpu.core_type = #tpu.core_type<tc>, window_params = [{transform_indices = @transform_0, window_bounds = array<i64: 1, 8, 32>}, {transform_indices = @transform_1, window_bounds = array<i64: 1, 8, 32>}, {transform_indices = @transform_2, window_bounds = array<i64: 1, 8, 32>}, {pipeline_mode = #tpu.pipeline_mode<synchronous>, transform_indices = @transform_3, window_bounds = array<i64: 32, 32>}, {pipeline_mode = #tpu.pipeline_mode<synchronous>, transform_indices = @transform_4, window_bounds = array<i64: 32, 32>}, {pipeline_mode = #tpu.pipeline_mode<synchronous>, transform_indices = @transform_5, window_bounds = array<i64: 32, 32>}, {pipeline_mode = #tpu.pipeline_mode<synchronous>, transform_indices = @transform_6, window_bounds = array<i64: 32, 32>}, {pipeline_mode = #tpu.pipeline_mode<synchronous>, transform_indices = @transform_7, window_bounds = array<i64: 1, 32>}, {transform_indices = @transform_8, window_bounds = array<i64: 1, 8, 32>}]} {
    %c0 = arith.constant 0 : index
    %c0_0 = arith.constant 0 : index
    %c0_1 = arith.constant 0 : index
    %0 = vector.load %arg3[%c0, %c0_0, %c0_1] : memref<1x8x32xf32, #tpu.memory_space<vmem>>, vector<1x8x32xf32>
    %1 = vector.shape_cast %0 : vector<1x8x32xf32> to vector<8x32xf32>
    %c0_2 = arith.constant 0 : index
    %c0_3 = arith.constant 0 : index
    %c0_4 = arith.constant 0 : index
    %2 = vector.load %arg2[%c0_2, %c0_3, %c0_4] : memref<1x8x32xf32, #tpu.memory_space<vmem>>, vector<1x8x32xf32>
    %3 = vector.shape_cast %2 : vector<1x8x32xf32> to vector<8x32xf32>
    %c0_5 = arith.constant 0 : index
    %c0_6 = arith.constant 0 : index
    %c0_7 = arith.constant 0 : index
    %4 = vector.load %arg1[%c0_5, %c0_6, %c0_7] : memref<1x8x32xf32, #tpu.memory_space<vmem>>, vector<1x8x32xf32>
    %5 = vector.shape_cast %4 : vector<1x8x32xf32> to vector<8x32xf32>
    %c0_8 = arith.constant 0 : index
    %c0_9 = arith.constant 0 : index
    %6 = vector.load %arg6[%c0_8, %c0_9] : memref<32x32xf32, #tpu.memory_space<vmem>>, vector<32x32xf32>
    %cst = arith.constant dense<0.000000e+00> : vector<8x32xf32>
    %7 = tpu.matmul %1, %6, %cst {dimension_numbers = #tpu.dot_dimension_numbers<[1], [0], [0], [1], [0, 0, 1, 1], [], []>} : vector<8x32xf32>, vector<32x32xf32>, vector<8x32xf32> -> vector<8x32xf32>
    %c0_10 = arith.constant 0 : index
    %c0_11 = arith.constant 0 : index
    %8 = vector.load %arg5[%c0_10, %c0_11] : memref<32x32xf32, #tpu.memory_space<vmem>>, vector<32x32xf32>
    %cst_12 = arith.constant dense<0.000000e+00> : vector<8x32xf32>
    %9 = tpu.matmul %3, %8, %cst_12 {dimension_numbers = #tpu.dot_dimension_numbers<[1], [0], [0], [1], [0, 0, 1, 1], [], []>} : vector<8x32xf32>, vector<32x32xf32>, vector<8x32xf32> -> vector<8x32xf32>
    %c0_13 = arith.constant 0 : index
    %c0_14 = arith.constant 0 : index
    %10 = vector.load %arg4[%c0_13, %c0_14] : memref<32x32xf32, #tpu.memory_space<vmem>>, vector<32x32xf32>
    %cst_15 = arith.constant dense<0.000000e+00> : vector<8x32xf32>
    %11 = tpu.matmul %5, %10, %cst_15 {dimension_numbers = #tpu.dot_dimension_numbers<[1], [0], [0], [1], [0, 0, 1, 1], [], []>} : vector<8x32xf32>, vector<32x32xf32>, vector<8x32xf32> -> vector<8x32xf32>
    %cst_16 = arith.constant 0.353553385 : f32
    %12 = vector.broadcast %cst_16 : f32 to vector<8x32xf32>
    %13 = arith.mulf %7, %12 : vector<8x32xf32>
    %14 = vector.shape_cast %13 : vector<8x32xf32> to vector<1x8x32xf32>
    %15 = vector.shape_cast %9 : vector<8x32xf32> to vector<1x8x32xf32>
    %16 = vector.shape_cast %11 : vector<8x32xf32> to vector<1x8x32xf32>
    %cst_17 = arith.constant 0.000000e+00 : f32
    %17 = vector.broadcast %cst_17 : f32 to vector<8x32xf32>
    %18 = vector.extract_strided_slice %14 {offsets = [0, 0, 0], sizes = [1, 8, 8], strides = [1, 1, 1]} : vector<1x8x32xf32> to vector<1x8x8xf32>
    %19 = vector.extract_strided_slice %15 {offsets = [0, 0, 0], sizes = [1, 8, 8], strides = [1, 1, 1]} : vector<1x8x32xf32> to vector<1x8x8xf32>
    %20 = vector.extract_strided_slice %16 {offsets = [0, 0, 0], sizes = [1, 8, 8], strides = [1, 1, 1]} : vector<1x8x32xf32> to vector<1x8x8xf32>
    "tpu.trace_start"() <{level = 10 : i32, message = "bqd,bkd->bqk"}> : () -> ()
    %cst_18 = arith.constant dense<0.000000e+00> : vector<1x8x8xf32>
    %21 = tpu.matmul %18, %19, %cst_18 {dimension_numbers = #tpu.dot_dimension_numbers<[2], [2], [1], [1], [0, 0, 0, 1, 1, 1], [0], [0]>} : vector<1x8x8xf32>, vector<1x8x8xf32>, vector<1x8x8xf32> -> vector<1x8x8xf32>
    "tpu.trace_stop"() : () -> ()
    %cst_19 = arith.constant dense<0xFF800000> : vector<1x8xf32>
    %22 = vector.multi_reduction <maximumf>, %21, %cst_19 [2] : vector<1x8x8xf32> to vector<1x8xf32>
    %23 = vector.shape_cast %22 : vector<1x8xf32> to vector<1x8x1xf32>
    %24 = vector.broadcast %23 : vector<1x8x1xf32> to vector<1x8x8xf32>
    %25 = arith.subf %21, %24 : vector<1x8x8xf32>
    %26 = math.exp %25 : vector<1x8x8xf32>
    %cst_20 = arith.constant dense<0.000000e+00> : vector<1x8xf32>
    %27 = vector.multi_reduction <add>, %26, %cst_20 [2] : vector<1x8x8xf32> to vector<1x8xf32>
    %28 = vector.shape_cast %27 : vector<1x8xf32> to vector<1x8x1xf32>
    "tpu.trace_start"() <{level = 10 : i32, message = "bqk,bkd->bqd"}> : () -> ()
    %cst_21 = arith.constant dense<0.000000e+00> : vector<1x8x8xf32>
    %29 = tpu.matmul %26, %20, %cst_21 {dimension_numbers = #tpu.dot_dimension_numbers<[2], [1], [1], [2], [0, 0, 0, 1, 1, 2], [0], [0]>} : vector<1x8x8xf32>, vector<1x8x8xf32>, vector<1x8x8xf32> -> vector<1x8x8xf32>
    "tpu.trace_stop"() : () -> ()
    %30 = tpu.reciprocal %28 : vector<1x8x1xf32> -> vector<1x8x1xf32>
    %31 = vector.broadcast %30 : vector<1x8x1xf32> to vector<1x8x8xf32>
    %32 = arith.mulf %29, %31 : vector<1x8x8xf32>
    %c0_22 = arith.constant 0 : index
    %c0_23 = arith.constant 0 : index
    %33 = vector.load %arg7[%c0_22, %c0_23] : memref<32x32xf32, #tpu.memory_space<vmem>>, vector<8x32xf32>
    %34 = vector.shape_cast %32 : vector<1x8x8xf32> to vector<8x8xf32>
    %cst_24 = arith.constant dense<0.000000e+00> : vector<8x32xf32>
    %35 = tpu.matmul %34, %33, %cst_24 {dimension_numbers = #tpu.dot_dimension_numbers<[1], [0], [0], [1], [0, 0, 1, 1], [], []>} : vector<8x8xf32>, vector<8x32xf32>, vector<8x32xf32> -> vector<8x32xf32>
    %36 = arith.addf %17, %35 : vector<8x32xf32>
    %37 = vector.extract_strided_slice %14 {offsets = [0, 0, 8], sizes = [1, 8, 8], strides = [1, 1, 1]} : vector<1x8x32xf32> to vector<1x8x8xf32>
    %38 = vector.extract_strided_slice %15 {offsets = [0, 0, 8], sizes = [1, 8, 8], strides = [1, 1, 1]} : vector<1x8x32xf32> to vector<1x8x8xf32>
    %39 = vector.extract_strided_slice %16 {offsets = [0, 0, 8], sizes = [1, 8, 8], strides = [1, 1, 1]} : vector<1x8x32xf32> to vector<1x8x8xf32>
    "tpu.trace_start"() <{level = 10 : i32, message = "bqd,bkd->bqk"}> : () -> ()
    %cst_25 = arith.constant dense<0.000000e+00> : vector<1x8x8xf32>
    %40 = tpu.matmul %37, %38, %cst_25 {dimension_numbers = #tpu.dot_dimension_numbers<[2], [2], [1], [1], [0, 0, 0, 1, 1, 1], [0], [0]>} : vector<1x8x8xf32>, vector<1x8x8xf32>, vector<1x8x8xf32> -> vector<1x8x8xf32>
    "tpu.trace_stop"() : () -> ()
    %cst_26 = arith.constant dense<0xFF800000> : vector<1x8xf32>
    %41 = vector.multi_reduction <maximumf>, %40, %cst_26 [2] : vector<1x8x8xf32> to vector<1x8xf32>
    %42 = vector.shape_cast %41 : vector<1x8xf32> to vector<1x8x1xf32>
    %43 = vector.broadcast %42 : vector<1x8x1xf32> to vector<1x8x8xf32>
    %44 = arith.subf %40, %43 : vector<1x8x8xf32>
    %45 = math.exp %44 : vector<1x8x8xf32>
    %cst_27 = arith.constant dense<0.000000e+00> : vector<1x8xf32>
    %46 = vector.multi_reduction <add>, %45, %cst_27 [2] : vector<1x8x8xf32> to vector<1x8xf32>
    %47 = vector.shape_cast %46 : vector<1x8xf32> to vector<1x8x1xf32>
    "tpu.trace_start"() <{level = 10 : i32, message = "bqk,bkd->bqd"}> : () -> ()
    %cst_28 = arith.constant dense<0.000000e+00> : vector<1x8x8xf32>
    %48 = tpu.matmul %45, %39, %cst_28 {dimension_numbers = #tpu.dot_dimension_numbers<[2], [1], [1], [2], [0, 0, 0, 1, 1, 2], [0], [0]>} : vector<1x8x8xf32>, vector<1x8x8xf32>, vector<1x8x8xf32> -> vector<1x8x8xf32>
    "tpu.trace_stop"() : () -> ()
    %49 = tpu.reciprocal %47 : vector<1x8x1xf32> -> vector<1x8x1xf32>
    %50 = vector.broadcast %49 : vector<1x8x1xf32> to vector<1x8x8xf32>
    %51 = arith.mulf %48, %50 : vector<1x8x8xf32>
    %c8 = arith.constant 8 : index
    %c0_29 = arith.constant 0 : index
    %52 = vector.load %arg7[%c8, %c0_29] : memref<32x32xf32, #tpu.memory_space<vmem>>, vector<8x32xf32>
    %53 = vector.shape_cast %51 : vector<1x8x8xf32> to vector<8x8xf32>
    %cst_30 = arith.constant dense<0.000000e+00> : vector<8x32xf32>
    %54 = tpu.matmul %53, %52, %cst_30 {dimension_numbers = #tpu.dot_dimension_numbers<[1], [0], [0], [1], [0, 0, 1, 1], [], []>} : vector<8x8xf32>, vector<8x32xf32>, vector<8x32xf32> -> vector<8x32xf32>
    %55 = arith.addf %36, %54 : vector<8x32xf32>
    %56 = vector.extract_strided_slice %14 {offsets = [0, 0, 16], sizes = [1, 8, 8], strides = [1, 1, 1]} : vector<1x8x32xf32> to vector<1x8x8xf32>
    %57 = vector.extract_strided_slice %15 {offsets = [0, 0, 16], sizes = [1, 8, 8], strides = [1, 1, 1]} : vector<1x8x32xf32> to vector<1x8x8xf32>
    %58 = vector.extract_strided_slice %16 {offsets = [0, 0, 16], sizes = [1, 8, 8], strides = [1, 1, 1]} : vector<1x8x32xf32> to vector<1x8x8xf32>
    "tpu.trace_start"() <{level = 10 : i32, message = "bqd,bkd->bqk"}> : () -> ()
    %cst_31 = arith.constant dense<0.000000e+00> : vector<1x8x8xf32>
    %59 = tpu.matmul %56, %57, %cst_31 {dimension_numbers = #tpu.dot_dimension_numbers<[2], [2], [1], [1], [0, 0, 0, 1, 1, 1], [0], [0]>} : vector<1x8x8xf32>, vector<1x8x8xf32>, vector<1x8x8xf32> -> vector<1x8x8xf32>
    "tpu.trace_stop"() : () -> ()
    %cst_32 = arith.constant dense<0xFF800000> : vector<1x8xf32>
    %60 = vector.multi_reduction <maximumf>, %59, %cst_32 [2] : vector<1x8x8xf32> to vector<1x8xf32>
    %61 = vector.shape_cast %60 : vector<1x8xf32> to vector<1x8x1xf32>
    %62 = vector.broadcast %61 : vector<1x8x1xf32> to vector<1x8x8xf32>
    %63 = arith.subf %59, %62 : vector<1x8x8xf32>
    %64 = math.exp %63 : vector<1x8x8xf32>
    %cst_33 = arith.constant dense<0.000000e+00> : vector<1x8xf32>
    %65 = vector.multi_reduction <add>, %64, %cst_33 [2] : vector<1x8x8xf32> to vector<1x8xf32>
    %66 = vector.shape_cast %65 : vector<1x8xf32> to vector<1x8x1xf32>
    "tpu.trace_start"() <{level = 10 : i32, message = "bqk,bkd->bqd"}> : () -> ()
    %cst_34 = arith.constant dense<0.000000e+00> : vector<1x8x8xf32>
    %67 = tpu.matmul %64, %58, %cst_34 {dimension_numbers = #tpu.dot_dimension_numbers<[2], [1], [1], [2], [0, 0, 0, 1, 1, 2], [0], [0]>} : vector<1x8x8xf32>, vector<1x8x8xf32>, vector<1x8x8xf32> -> vector<1x8x8xf32>
    "tpu.trace_stop"() : () -> ()
    %68 = tpu.reciprocal %66 : vector<1x8x1xf32> -> vector<1x8x1xf32>
    %69 = vector.broadcast %68 : vector<1x8x1xf32> to vector<1x8x8xf32>
    %70 = arith.mulf %67, %69 : vector<1x8x8xf32>
    %c16 = arith.constant 16 : index
    %c0_35 = arith.constant 0 : index
    %71 = vector.load %arg7[%c16, %c0_35] : memref<32x32xf32, #tpu.memory_space<vmem>>, vector<8x32xf32>
    %72 = vector.shape_cast %70 : vector<1x8x8xf32> to vector<8x8xf32>
    %cst_36 = arith.constant dense<0.000000e+00> : vector<8x32xf32>
    %73 = tpu.matmul %72, %71, %cst_36 {dimension_numbers = #tpu.dot_dimension_numbers<[1], [0], [0], [1], [0, 0, 1, 1], [], []>} : vector<8x8xf32>, vector<8x32xf32>, vector<8x32xf32> -> vector<8x32xf32>
    %74 = arith.addf %55, %73 : vector<8x32xf32>
    %75 = vector.extract_strided_slice %14 {offsets = [0, 0, 24], sizes = [1, 8, 8], strides = [1, 1, 1]} : vector<1x8x32xf32> to vector<1x8x8xf32>
    %76 = vector.extract_strided_slice %15 {offsets = [0, 0, 24], sizes = [1, 8, 8], strides = [1, 1, 1]} : vector<1x8x32xf32> to vector<1x8x8xf32>
    %77 = vector.extract_strided_slice %16 {offsets = [0, 0, 24], sizes = [1, 8, 8], strides = [1, 1, 1]} : vector<1x8x32xf32> to vector<1x8x8xf32>
    "tpu.trace_start"() <{level = 10 : i32, message = "bqd,bkd->bqk"}> : () -> ()
    %cst_37 = arith.constant dense<0.000000e+00> : vector<1x8x8xf32>
    %78 = tpu.matmul %75, %76, %cst_37 {dimension_numbers = #tpu.dot_dimension_numbers<[2], [2], [1], [1], [0, 0, 0, 1, 1, 1], [0], [0]>} : vector<1x8x8xf32>, vector<1x8x8xf32>, vector<1x8x8xf32> -> vector<1x8x8xf32>
    "tpu.trace_stop"() : () -> ()
    %cst_38 = arith.constant dense<0xFF800000> : vector<1x8xf32>
    %79 = vector.multi_reduction <maximumf>, %78, %cst_38 [2] : vector<1x8x8xf32> to vector<1x8xf32>
    %80 = vector.shape_cast %79 : vector<1x8xf32> to vector<1x8x1xf32>
    %81 = vector.broadcast %80 : vector<1x8x1xf32> to vector<1x8x8xf32>
    %82 = arith.subf %78, %81 : vector<1x8x8xf32>
    %83 = math.exp %82 : vector<1x8x8xf32>
    %cst_39 = arith.constant dense<0.000000e+00> : vector<1x8xf32>
    %84 = vector.multi_reduction <add>, %83, %cst_39 [2] : vector<1x8x8xf32> to vector<1x8xf32>
    %85 = vector.shape_cast %84 : vector<1x8xf32> to vector<1x8x1xf32>
    "tpu.trace_start"() <{level = 10 : i32, message = "bqk,bkd->bqd"}> : () -> ()
    %cst_40 = arith.constant dense<0.000000e+00> : vector<1x8x8xf32>
    %86 = tpu.matmul %83, %77, %cst_40 {dimension_numbers = #tpu.dot_dimension_numbers<[2], [1], [1], [2], [0, 0, 0, 1, 1, 2], [0], [0]>} : vector<1x8x8xf32>, vector<1x8x8xf32>, vector<1x8x8xf32> -> vector<1x8x8xf32>
    "tpu.trace_stop"() : () -> ()
    %87 = tpu.reciprocal %85 : vector<1x8x1xf32> -> vector<1x8x1xf32>
    %88 = vector.broadcast %87 : vector<1x8x1xf32> to vector<1x8x8xf32>
    %89 = arith.mulf %86, %88 : vector<1x8x8xf32>
    %c24 = arith.constant 24 : index
    %c0_41 = arith.constant 0 : index
    %90 = vector.load %arg7[%c24, %c0_41] : memref<32x32xf32, #tpu.memory_space<vmem>>, vector<8x32xf32>
    %91 = vector.shape_cast %89 : vector<1x8x8xf32> to vector<8x8xf32>
    %cst_42 = arith.constant dense<0.000000e+00> : vector<8x32xf32>
    %92 = tpu.matmul %91, %90, %cst_42 {dimension_numbers = #tpu.dot_dimension_numbers<[1], [0], [0], [1], [0, 0, 1, 1], [], []>} : vector<8x8xf32>, vector<8x32xf32>, vector<8x32xf32> -> vector<8x32xf32>
    %93 = arith.addf %74, %92 : vector<8x32xf32>
    %c0_43 = arith.constant 0 : index
    %c0_44 = arith.constant 0 : index
    %94 = vector.load %arg8[%c0_43, %c0_44] : memref<1x32xf32, #tpu.memory_space<vmem>>, vector<1x32xf32>
    %95 = vector.broadcast %94 : vector<1x32xf32> to vector<8x32xf32>
    %96 = arith.addf %93, %95 : vector<8x32xf32>
    %97 = vector.shape_cast %96 : vector<8x32xf32> to vector<1x8x32xf32>
    %c0_45 = arith.constant 0 : index
    %c0_46 = arith.constant 0 : index
    %c0_47 = arith.constant 0 : index
    %98 = vector.load %arg9[%c0_45, %c0_46, %c0_47] : memref<1x8x32xf32, #tpu.memory_space<vmem>>, vector<1x8x32xf32>
    tpu.vector_store %arg9[%c0_45, %c0_46, %c0_47], %97 {strides = array<i32>} : memref<1x8x32xf32, #tpu.memory_space<vmem>>, vector<1x8x32xf32>,
    return
  }
  func.func @transform_0(%arg0: i32) -> (i32, i32, i32) {
    %c0_i32 = arith.constant 0 : i32
    %c0_i32_0 = arith.constant 0 : i32
    %c0_i32_1 = arith.constant 0 : i32
    return %arg0, %c0_i32, %c0_i32_0 : i32, i32, i32
  }
  func.func @transform_1(%arg0: i32) -> (i32, i32, i32) {
    %c0_i32 = arith.constant 0 : i32
    %c0_i32_0 = arith.constant 0 : i32
    %c0_i32_1 = arith.constant 0 : i32
    return %arg0, %c0_i32, %c0_i32_0 : i32, i32, i32
  }
  func.func @transform_2(%arg0: i32) -> (i32, i32, i32) {
    %c0_i32 = arith.constant 0 : i32
    %c0_i32_0 = arith.constant 0 : i32
    %c0_i32_1 = arith.constant 0 : i32
    return %arg0, %c0_i32, %c0_i32_0 : i32, i32, i32
  }
  func.func @transform_3(%arg0: i32) -> (i32, i32) {
    %c0_i32 = arith.constant 0 : i32
    %c0_i32_0 = arith.constant 0 : i32
    %c0_i32_1 = arith.constant 0 : i32
    return %c0_i32, %c0_i32_0 : i32, i32
  }
  func.func @transform_4(%arg0: i32) -> (i32, i32) {
    %c0_i32 = arith.constant 0 : i32
    %c0_i32_0 = arith.constant 0 : i32
    %c0_i32_1 = arith.constant 0 : i32
    return %c0_i32, %c0_i32_0 : i32, i32
  }
  func.func @transform_5(%arg0: i32) -> (i32, i32) {
    %c0_i32 = arith.constant 0 : i32
    %c0_i32_0 = arith.constant 0 : i32
    %c0_i32_1 = arith.constant 0 : i32
    return %c0_i32, %c0_i32_0 : i32, i32
  }
  func.func @transform_6(%arg0: i32) -> (i32, i32) {
    %c0_i32 = arith.constant 0 : i32
    %c0_i32_0 = arith.constant 0 : i32
    %c0_i32_1 = arith.constant 0 : i32
    return %c0_i32, %c0_i32_0 : i32, i32
  }
  func.func @transform_7(%arg0: i32) -> (i32, i32) {
    %c0_i32 = arith.constant 0 : i32
    %c0_i32_0 = arith.constant 0 : i32
    %c0_i32_1 = arith.constant 0 : i32
    return %c0_i32, %c0_i32_0 : i32, i32
  }
  func.func @transform_8(%arg0: i32) -> (i32, i32, i32) {
    %c0_i32 = arith.constant 0 : i32
    %c0_i32_0 = arith.constant 0 : i32
    %c0_i32_1 = arith.constant 0 : i32
    return %arg0, %c0_i32, %c0_i32_0 : i32, i32, i32
  }
}

</mosaic_0001>

<bundles_post_ra>
// kernel: tpu_custom_call.1
= control target key start
LH: loop header
LB: loop body
LE: loop exit
PB: predicated region body
PF: predicated region fallthrough
CT: control target
= control target key end

     0   :  { %s2821_s0 = inlined_call_operand.hbm [shape: f32[2,8,32], index: 0, kind: input, shape index: {}]   ;;  %s2822_s1 = inlined_call_operand.hbm [shape: f32[2,8,32], index: 1, kind: input, shape index: {}]   ;;  %s2823_s2 = inlined_call_operand.hbm [shape: f32[2,8,32], index: 2, kind: input, shape index: {}]   ;;  %s2824_s3 = inlined_call_operand.hbm [shape: f32[32,32], index: 3, kind: input, shape index: {}]   ;;  %s2825_s4 = inlined_call_operand.hbm [shape: f32[32,32], index: 4, kind: input, shape index: {}]   ;;  %s2826_s5 = inlined_call_operand.hbm [shape: f32[32,32], index: 5, kind: input, shape index: {}]   ;;  %s2827_s6 = inlined_call_operand.hbm [shape: f32[32,32], index: 6, kind: input, shape index: {}]   ;;  %s2828_s7 = inlined_call_operand.vmem [shape: f32[1,32], index: 7, kind: input, shape index: {}]   ;;  %s2829_s8 = inlined_call_operand.hbm [shape: f32[2,8,32], index: 8, kind: output, shape index: {}]  }
   0x1   :  { %2848 = sst [smem:[#allocation24_spill]] %s2821_s0 }
   0x2   :  { %2849 = sst [smem:[#allocation25_spill]] %s2822_s1 }
   0x3   :  { %2850 = sst [smem:[#allocation26_spill]] %s2824_s3 }
   0x4   :  { %2851 = sst [smem:[#allocation27_spill]] %s2826_s5 }
   0x5   :  { %13 = vsyncpa [#allocation3], 0 }
   0x6   :  { %15 = vsyncpa [#allocation3 + $0x1], 0 }
   0x7   :  { %16 = vsyncpa [#allocation6], 0 }
   0x8   :  { %18 = vsyncpa [#allocation6 + $0x1], 0 }
   0x9   :  { %19 = vsyncpa [#allocation9], 0 }
   0xa   :  { %20 = vsyncpa [#allocation12], 0 }
   0xb   :  { %21 = vsyncpa [#allocation4], 0 }
   0xc   :  { %23 = vsyncpa [#allocation4 + $0x1], 0  ;;  %s2439_s27 = smov 0   ;;  %s2441_s28 = smov 0  }
   0xd   :  { %s2443_s29 = smov 0   ;;  %s2445_s30 = smov 0  }
   0xe LB: > { %2852 = sst [smem:[#allocation20_spill]] %s2377_s30  ;;  %s2379_s9 = smov [#allocation8]   ;;  %s2377_s30 = sphi %s2445_s30, %s2885_s30   ;;  %s2373_s29 = sphi %s2443_s29, %s2889_s29   ;;  %s2369_s28 = sphi %s2441_s28, %s2888_s28   ;;  %s2365_s27 = sphi %s2439_s27, %s2887_s27  }
   0xf   : > { %s255_s10 = sshll.u32 %s2379_s9, 4  ;;  %s2460_s11 = sadd.s32 4294967295, %s2377_s30   ;;  %s256_s10 = int_to_ptr.vmem [resolvable:$true] %s255_s10 }
  0x10   : > { %p1816_p0 = scmp.ge.s32.totalorder %s2377_s30, 1  ;;  %p2840_p1 = scmp.eq.s32.totalorder %s2460_s11, 0 }
  0x11   : > { %p243_p2 = scmp.lt.s32.totalorder %s2377_s30, 3  ;;  %s2380_s13 = smov [#allocation11]  }
  0x12   : > { %s281_s14 = sshll.u32 %s2380_s13, 4  ;;  %s2124_s16 = scalar_lea.vmem %s256_s10, 512  ;;  %s282_s14 = int_to_ptr.vmem [resolvable:$true] %s281_s14 }
  0x13   : > { %p2465_p3 = pnand %p1816_p0, %p243_p2  ;;  %p2125_p8 = scmp.ne.s32.totalorder %s256_s10, %s2124_s16 }
  0x14   : > { %p2132_p11 = scmp.lt.s32.totalorder %s256_s10, %s256_s10  ;;  %p2133_p12 = scmp.lt.s32.totalorder %s2124_s16, %s2124_s16 }
  0x15   : > { %s2853_s12 = scalar_select %p2465_p3, 1, 0 }
  0x16   : > { %p2017_p5 = pneg %p2465_p3  ;;  %p2134_p13 = por %p2133_p12, %p2132_p11 }
  0x18   : > { %p2474_p6 = pnand %p2017_p5, %p2840_p1 }
  0x1a   : > { %s2854_s15 = scalar_select %p2474_p6, 1, 0 }
  0x1b   : > { %p2830_p7 = pneg %p2474_p6 }
  0x1d   : > { %p2127_p9 = pnand %p2125_p8, %p2830_p7 }
  0x1f   : > { %p2128_p10 = pneg %p2127_p9 }
  0x21   : > { %p2135_p0 = pnand %p2134_p13, %p2128_p10 }
  0x23   : > { %2138 = shalt.err (!%p2135_p0)
}
  0x24   : > { %s2832_s17 = smov 128   ;;  %s2834_s18 = smov 8  }
  0x25   : > { %s2855_s3 = sld [smem:[#allocation26_spill]]  ;;  %s2150_s21 = scalar_lea.vmem %s282_s14, 512 }
  0x26   : > { %p2151_p2 = scmp.ne.s32.totalorder %s282_s14, %s2150_s21  ;;  %p2158_p9 = scmp.lt.s32.totalorder %s282_s14, %s282_s14 }
  0x27   : > { %p2159_p10 = scmp.lt.s32.totalorder %s2150_s21, %s2150_s21 }
  0x28   : > { %p2153_p5 = pnand %p2151_p2, %p2830_p7 }
  0x29   : > { %p2160_p11 = por %p2159_p10, %p2158_p9 }
  0x2a   : > { %p2154_p8 = pneg %p2153_p5 }
  0x2b   : > { %2020 = dma.hbm_to_vmem [thread:$0]  (!%p2474_p6), %s2855_s3, 512, %s256_s10, [#allocation9], %s2832_s17, %s2832_s17, %s2834_s18  }
  0x2c   : > { %p2161_p12 = pnand %p2160_p11, %p2154_p8 }
  0x2e   : > { %2164 = shalt.err (!%p2161_p12)
}
  0x2f   : > { %s2856_s5 = sld [smem:[#allocation27_spill]]  ;;  %s1815_s24 = sadd.s32 4294967294, %s2377_s30  }
  0x30   : > { %s2504_s25 = sadd.s32 1, %s2377_s30   ;;  %s36_s9 = sadd.s32 1, %s2373_s29 }
  0x31   : > { %2857 = sst [smem:[#allocation21_spill]] %s2504_s25  ;;  %s33_s26 = ssub.s32 %s2377_s30, %s2504_s25 }
  0x32   : > { %p34_p13 = scmp.eq.s32.totalorder %s33_s26, 0  ;;  %p43_p0 = scmp.ne.s32.totalorder %s2373_s29, %s2369_s28 }
  0x33   : > { %p44_p2 = scmp.eq.s32.totalorder %s2377_s30, 0  ;;  %p49_p5 = scmp.ne.s32.totalorder %s2369_s28, %s2365_s27 }
  0x34   : > { %s2515_s10 = scalar_select %p34_p13, %s2373_s29, %s36_s9  }
  0x35   : > { %2026 = dma.hbm_to_vmem [thread:$0]  (!%p2474_p6), %s2856_s5, 512, %s282_s14, [#allocation12], %s2832_s17, %s2832_s17, %s2834_s18  }
  0x36   : > { %2858 = sst [smem:[#allocation22_spill]] %s2515_s10  ;;  %p45_p8 = por %p44_p2, %p43_p0 }
  0x37   : > { %p2519_p9 = por %p2840_p1, %p49_p5  ;;  %p230_p10 = scmp.eq.s32.totalorder %s2460_s11, 1 }
  0x38   : > { %p236_p11 = scmp.eq.s32.totalorder %s1815_s24, 1  ;;  %p2048_p12 = scmp.lt.s32.totalorder %s2377_s30, 2 }
  0x39   : > { %s2859_s13 = scalar_select %p2519_p9, 1, 0 }
  0x3a   : > { %s2831_s14 = sand.u32 1, %s2373_s29   ;;  %p2526_p4 = por %p230_p10, %p43_p0 }
  0x3b   : > { %p2530_p7 = por %p236_p11, %p49_p5  ;;  %s2536_s20 = sshll.u32 %s2831_s14, 3 }
  0x3c   : > { %s2860_s16 = scalar_select %p2526_p4, 1, 0 }
  0x3d   : > { %s2861_s19 = scalar_select %p2530_p7, 1, 0 }
  0x3e   : > { %s2539_s21 = sshll.u32 %s2377_s30, 7  ;;  %p2541_p13 = pnand %p2048_p12, %p45_p8 }
  0x3f   : > { %2862 = sst [smem:[#allocation23_spill]] %s2861_s19  ;;  %s329_s23 = sand.u32 1, %s2377_s30  }
  0x40   : > { %s2864_s1 = sld [smem:[#allocation25_spill]]  ;;  %s333_s14 = scalar_lea.vmem [#allocation5], %s2536_s20 }
  0x41   : > { %s340_s17 = sshll.u32 %s333_s14, 4  ;;  %s2383_s18 = smov [#allocation10]   ;;  %s2553_s17 = int_to_ptr.vmem [resolvable:$true] %s340_s17 }
  0x42   : > { %s268_s3 = sshll.u32 %s2383_s18, 4  ;;  %s2555_s5 = scalar_lea.sflag [#allocation6], %s329_s23  ;;  %s269_s3 = int_to_ptr.vmem [resolvable:$true] %s268_s3 }
  0x43   : > { %p2561_p2 = pneg %p2541_p13 }
  0x45   : > { %s2865_s25 = scalar_select %p2561_p2, 1, 0 }
  0x46   : > { %s2550_s9 = scalar_lea.hbm %s2864_s1, %s2539_s21  ;;  %s2170_s14 = scalar_lea.hbm %s2864_s1, 256 }
  0x47   : > { %s2165_s10 = scalar_lea.hbm %s2550_s9, 128  ;;  %p2171_p10 = scmp.lt.s32.totalorder %s2550_s9, %s2864_s1 }
  0x48   : > { %p2166_p0 = scmp.ne.s32.totalorder %s2550_s9, %s2165_s10  ;;  %p2172_p11 = scmp.lt.s32.totalorder %s2170_s14, %s2165_s10 }
  0x4a   : > { %p2168_p5 = pnand %p2561_p2, %p2166_p0  ;;  %p2173_p12 = por %p2172_p11, %p2171_p10 }
  0x4c   : > { %p2169_p8 = pneg %p2168_p5 }
  0x4e   : > { %p2174_p1 = pnand %p2173_p12, %p2169_p8 }
  0x50   : > { %2177 = shalt.err (!%p2174_p1)
}
  0x51   : > { %s2178_s18 = scalar_lea.vmem %s2553_s17, 128  ;;  %s2384_s23 = smov [#allocation5]  }
  0x52   : > { %p2179_p7 = scmp.ne.s32.totalorder %s2553_s17, %s2178_s18  ;;  %s2183_s24 = sshll.u32 %s2384_s23, 4  ;;  %s2184_s24 = int_to_ptr.vmem [resolvable:$false] %s2183_s24 }
  0x53   : > { %s2185_s26 = scalar_lea.vmem %s2184_s24, 256  ;;  %p2186_p4 = scmp.lt.s32.totalorder %s2553_s17, %s2184_s24 }
  0x54   : > { %p2181_p0 = pnand %p2179_p7, %p2561_p2  ;;  %p2187_p9 = scmp.lt.s32.totalorder %s2185_s26, %s2178_s18 }
  0x56   : > { %p2182_p5 = pneg %p2181_p0  ;;  %p2188_p3 = por %p2187_p9, %p2186_p4 }
  0x58   : > { %p2189_p6 = pnand %p2188_p3, %p2182_p5 }
  0x5a   : > { %2192 = shalt.err (!%p2189_p6)
}
  0x5b   : > { %2036 = dma.hbm_to_vmem [thread:$0]  (!%p2541_p13), %s2550_s9, 128, %s2553_s17, %s2555_s5  }
  0x5c   : > { %s2204_s30 = scalar_lea.vmem %s269_s3, 512  ;;  %p2866_p7 = scmp.ne.s32.totalorder %s2854_s15, 0 }
  0x5d   : > { %p2205_p1 = scmp.ne.s32.totalorder %s269_s3, %s2204_s30  ;;  %p2212_p12 = scmp.lt.s32.totalorder %s269_s3, %s269_s3 }
  0x5e   : > { %p2867_p8 = pneg %p2866_p7  ;;  %p2213_p0 = scmp.lt.s32.totalorder %s2204_s30, %s2204_s30 }
  0x60   : > { %p2207_p10 = pnand %p2205_p1, %p2867_p8  ;;  %p2214_p2 = por %p2213_p0, %p2212_p12 }
  0x62   : > { %p2208_p11 = pneg %p2207_p10 }
  0x64   : > { %p2215_p4 = pnand %p2214_p2, %p2208_p11 }
  0x66   : > { %2218 = shalt.err (!%p2215_p4)
}
  0x67   : > { %s2868_s10 = smov 8   ;;  %s2869_s19 = smov 128  }
  0x68   : > { %2023 = dma.hbm_to_vmem [thread:$0]  (!%p2866_p7), %s2825_s4, 512, %s269_s3, [#allocation9], %s2869_s19, %s2869_s19, %s2868_s10  }
  0x69   : > { %s2385_s17 = smov [#allocation13]   ;;  %p2870_p6 = pmov %p2867_p8 }
  0x6a   : > { %s294_s9 = sshll.u32 %s2385_s17, 4  ;;  %s295_s9 = int_to_ptr.vmem [resolvable:$true] %s294_s9 }
  0x6b   : > { %s2230_s23 = scalar_lea.vmem %s295_s9, 512  ;;  %p2238_p5 = scmp.lt.s32.totalorder %s295_s9, %s295_s9 }
  0x6c   : > { %p2231_p3 = scmp.ne.s32.totalorder %s295_s9, %s2230_s23  ;;  %p2239_p1 = scmp.lt.s32.totalorder %s2230_s23, %s2230_s23 }
  0x6e   : > { %p2233_p9 = pnand %p2231_p3, %p2870_p6  ;;  %p2240_p8 = por %p2239_p1, %p2238_p5 }
  0x70   : > { %p2234_p2 = pneg %p2233_p9 }
  0x72   : > { %p2241_p10 = pnand %p2240_p8, %p2234_p2 }
  0x74   : > { %2244 = shalt.err (!%p2241_p10)
}
  0x75   : > { %2029 = dma.hbm_to_vmem [thread:$0]  (!%p2866_p7), %s2827_s6, 512, %s295_s9, [#allocation12], %s2869_s19, %s2869_s19, %s2868_s10  }
  0x76   : > { %s2871_s0 = sld [smem:[#allocation24_spill]]  ;;  %s315_s15 = scalar_lea.vmem [#allocation2], %s2536_s20 }
  0x77   : > { %s322_s18 = sshll.u32 %s315_s15, 4  ;;  %s2872_s17 = sand.u32 1, %s2373_s29   ;;  %s323_s18 = int_to_ptr.vmem [resolvable:$true] %s322_s18 }
  0x78   : > { %s312_s23 = scalar_lea.sflag [#allocation3], %s2872_s17  ;;  %p2873_p12 = scmp.ne.s32.totalorder %s2865_s25, 0 }
  0x7c   : > { %s2610_s14 = scalar_lea.hbm %s2871_s0, %s2539_s21  ;;  %s2250_s19 = scalar_lea.hbm %s2871_s0, 256 }
  0x7d   : > { %s2245_s1 = scalar_lea.hbm %s2610_s14, 128  ;;  %p2251_p7 = scmp.lt.s32.totalorder %s2610_s14, %s2871_s0 }
  0x7e   : > { %p2246_p11 = scmp.ne.s32.totalorder %s2610_s14, %s2245_s1  ;;  %p2252_p3 = scmp.lt.s32.totalorder %s2250_s19, %s2245_s1 }
  0x80   : > { %p2248_p0 = pnand %p2246_p11, %p2873_p12  ;;  %p2253_p6 = por %p2252_p3, %p2251_p7 }
  0x82   : > { %p2249_p4 = pneg %p2248_p0 }
  0x84   : > { %p2254_p9 = pnand %p2253_p6, %p2249_p4 }
  0x86   : > { %2257 = shalt.err (!%p2254_p9)
}
  0x87   : > { %s2258_s26 = scalar_lea.vmem %s323_s18, 128  ;;  %s2386_s30 = smov [#allocation2]  }
  0x88   : > { %p2259_p2 = scmp.ne.s32.totalorder %s323_s18, %s2258_s26  ;;  %s2263_s15 = sshll.u32 %s2386_s30, 4  ;;  %s2264_s15 = int_to_ptr.vmem [resolvable:$false] %s2263_s15 }
  0x89   : > { %s2265_s17 = scalar_lea.vmem %s2264_s15, 256  ;;  %p2266_p8 = scmp.lt.s32.totalorder %s323_s18, %s2264_s15 }
  0x8a   : > { %p2261_p5 = pnand %p2259_p2, %p2873_p12  ;;  %p2267_p10 = scmp.lt.s32.totalorder %s2265_s17, %s2258_s26 }
  0x8c   : > { %p2262_p1 = pneg %p2261_p5  ;;  %p2268_p11 = por %p2267_p10, %p2266_p8 }
  0x8e   : > { %p2269_p0 = pnand %p2268_p11, %p2262_p1 }
  0x90   : > { %2272 = shalt.err (!%p2269_p0)
}
  0x91   : > { %2033 = dma.hbm_to_vmem [thread:$0]  (!%p2541_p13), %s2610_s14, 128, %s323_s18, %s312_s23  }
  0x92   : > { %s356_s10 = scalar_lea.hbm %s2823_s2, %s2539_s21  ;;  %s351_s19 = scalar_lea.vmem [#allocation7], %s2536_s20 }
  0x93   : > { %s358_s9 = sshll.u32 %s351_s19, 4  ;;  %s2273_s24 = scalar_lea.hbm %s356_s10, 128  ;;  %s359_s9 = int_to_ptr.vmem [resolvable:$true] %s358_s9 }
  0x94   : > { %p2274_p4 = scmp.ne.s32.totalorder %s356_s10, %s2273_s24  ;;  %s2278_s15 = scalar_lea.hbm %s2823_s2, 256 }
  0x95   : > { %p2279_p6 = scmp.lt.s32.totalorder %s356_s10, %s2823_s2  ;;  %p2280_p9 = scmp.lt.s32.totalorder %s2278_s15, %s2273_s24 }
  0x96   : > { %p2276_p7 = pnand %p2274_p4, %p2873_p12 }
  0x97   : > { %p2281_p2 = por %p2280_p9, %p2279_p6 }
  0x98   : > { %p2277_p3 = pneg %p2276_p7 }
  0x9a   : > { %p2282_p5 = pnand %p2281_p2, %p2277_p3 }
  0x9c   : > { %2285 = shalt.err (!%p2282_p5)
}
  0x9d   : > { %s2286_s20 = scalar_lea.vmem %s359_s9, 128  ;;  %s2387_s21 = smov [#allocation7]  }
  0x9e   : > { %p2287_p1 = scmp.ne.s32.totalorder %s359_s9, %s2286_s20  ;;  %s2291_s14 = sshll.u32 %s2387_s21, 4  ;;  %s2292_s14 = int_to_ptr.vmem [resolvable:$false] %s2291_s14 }
  0x9f   : > { %s2293_s18 = scalar_lea.vmem %s2292_s14, 256  ;;  %p2294_p11 = scmp.lt.s32.totalorder %s359_s9, %s2292_s14 }
  0xa0   : > { %p2289_p8 = pnand %p2287_p1, %p2873_p12  ;;  %p2295_p0 = scmp.lt.s32.totalorder %s2293_s18, %s2286_s20 }
  0xa2   : > { %p2290_p10 = pneg %p2289_p8  ;;  %p2296_p4 = por %p2295_p0, %p2294_p11 }
  0xa4   : > { %p2297_p7 = pnand %p2296_p4, %p2290_p10 }
  0xa6   : > { %2300 = shalt.err (!%p2297_p7)
}
  0xa7   : > { %2039 = dma.hbm_to_vmem [thread:$0]  (!%p2541_p13), %s356_s10, 128, %s359_s9, %s2555_s5  }
  0xa8   : > { %p2874_p3 = scmp.ne.s32.totalorder %s2853_s12, 0 }
  0xa9   : > { %s2652_s0 = sand.u32 (!%p2874_p3), 1, %s2369_s28   ;;  %p2875_p12 = scmp.ne.s32.totalorder (!%p2874_p3), %s2859_s13, 0 }
  0xaa   : > { %367 = sbr.rel (%p2874_p3) target bundleno = 2166 (0x876), region = 52  ;;  %s2655_s25 = sshll.u32 (!%p2874_p3), %s2652_s0, 3 }
  0xab   : > { %s370_s23 = scalar_lea.sflag (!%p2874_p3), [#allocation3], %s2652_s0  ;;  %s373_s1 = scalar_lea.vmem (!%p2874_p3), [#allocation2], %s2655_s25 }
  0xaf   : > { %2344 = dma.done.wait (%p2875_p12), %s370_s23, 128  }
  0xb0   : > { %2346 = vsyncadd (%p2875_p12), %s370_s23, 4294967168  ;;  %s378_s5 = sand.u32 1, %s2460_s11   ;;  %s382_s22 = scalar_lea.vmem [#allocation5], %s2655_s25 }
  0xb1   : > { %s379_s12 = scalar_lea.sflag [#allocation6], %s378_s5 }
  0xb2   : > { %2348 = dma.done.wait (%p2875_p12), %s379_s12, 256  }
  0xb3   : > { %2350 = vsyncadd (%p2875_p12), %s379_s12, 4294967040  ;;  %s391_s3 = scalar_lea.vmem [#allocation7], %s2655_s25  ;;  %p2876_p13 = scmp.eq.s32.totalorder %s2460_s11, 0 }
  0xb5   : > { %2352 = dma.done.wait (%p2876_p13), [#allocation9], 1024   ;;  %p2877_p6 = pmov %p2876_p13 }
  0xb7   : > { %2354 = vsyncadd (%p2877_p6), [#allocation9], 4294966272  ;;  %p2878_p9 = pmov %p2877_p6 }
  0xb8   : > { %p2879_p2 = pmov %p2877_p6 }
  0xb9   : > { %2356 = dma.done.wait (%p2878_p9), [#allocation12], 1024  }
  0xba   : > { %2358 = vsyncadd (%p2879_p2), [#allocation12], 4294966272  ;;  %v2388_v0 = vmov 0.0   ;;  %vm2389_vm0 = vmmov 0   ;;  %v456_v1 = vld [vmem:[#allocation11 + $0x18] sm:$0xff]  ;;  %v455_v3 = vld [vmem:[#allocation11 + $0x10] sm:$0xff] }
  0xbb   : > { %1900 = vmatprep.subr.mxu0 %v2388_v0  ;;  %1911 = vmatprep.subr.mxu1 %v2388_v0  ;;  %v534_v2 = vld [vmem:[#allocation10 + $0x18] sm:$0xff]  ;;  %v533_v4 = vld [vmem:[#allocation10 + $0x10] sm:$0xff]  ;;  %v454_v5 = vld [vmem:[#allocation11 + $0x8] sm:$0xff]  ;;  %vm457_vm1 = vcmask 261120   ;;  %vm686_vm2 = vcmask 64512   ;;  %s2390_s13 = smov 120  }
  0xbc   : > { %1908 = vmatprep.mubr.msk.f32.mxu0 %vm2389_vm0, %v2388_v0  ;;  %1919 = vmatprep.mubr.msk.f32.mxu1 %vm2389_vm0, %v2388_v0  ;;  %v532_v6 = vld [vmem:[#allocation10 + $0x8] sm:$0xff]  ;;  %v453_v7 = vld [vmem:[#allocation11] sm:$0xff]  ;;  %v450_v9 = vld [vmem:[%s391_s3] sm:$0xff]  ;;  %s2391_s10 = smov 112   ;;  %s2392_s19 = smov 104  }
  0xbd   : > { %1901 = vmatpush3.msra.mxu0 %v456_v1  ;;  %1912 = vmatpush3.msra.mxu1 %v534_v2  ;;  %v531_v8 = vld [vmem:[#allocation10] sm:$0xff]  ;;  %v611_v11 = vld [vmem:[#allocation8 + $0x18] sm:$0xff]  ;;  %v610_v12 = vld [vmem:[#allocation8 + $0x10] sm:$0xff]  ;;  %s1858_s26 = sshll.u32 %s2460_s11, 7  ;;  %s449_s30 = scalar_lea.vmem [#allocation14], %s2655_s25 }
  0xbe   : > { %1902 = vmatprep.subr.mxu0 %v2388_v0  ;;  %1913 = vmatprep.subr.mxu1 %v2388_v0  ;;  %v451_v10 = vld [vmem:[%s382_s22] sm:$0xff]  ;;  %v452_v15 = vld [vmem:[%s373_s1] sm:$0xff]  ;;  %s1664_s15 = sshll.u32 %s449_s30, 4  ;;  %s1662_s21 = scalar_lea.hbm %s2829_s8, %s1858_s26  ;;  %s1665_s15 = int_to_ptr.vmem [resolvable:$true] %s1664_s15 }
  0xbf   : > { %1903 = vmatpush3.msra.mxu0 %v455_v3  ;;  %1914 = vmatpush3.msra.mxu1 %v533_v4  ;;  %v609_v13 = vld [vmem:[#allocation8 + $0x8] sm:$0xff]  ;;  %v608_v14 = vld [vmem:[#allocation8] sm:$0xff]  ;;  %s1651_s14 = scalar_lea.sflag [#allocation4], %s2652_s0  ;;  %s2301_s18 = scalar_lea.vmem %s1665_s15, 128 }
  0xc0   : > { %1904 = vmatprep.subr.mxu0 %v2388_v0  ;;  %1915 = vmatprep.subr.mxu1 %v2388_v0  ;;  %v847_v40 = vld [vmem:[#allocation13] sm:$0xff]  ;;  %v1014_v43 = vld [vmem:[#allocation13 + $0x8] sm:$0xff]  ;;  %p2302_p5 = scmp.ne.s32.totalorder %s1665_s15, %s2301_s18  ;;  %p2880_p1 = scmp.ne.s32.totalorder %s2860_s16, 0 }
  0xc1   : > { %1905 = vmatpush3.msra.mxu0 %v454_v5  ;;  %1916 = vmatpush3.msra.mxu1 %v532_v6  ;;  %s2393_s23 = smov [#allocation14]  }
  0xc2   : > { %1906 = vmatprep.subr.mxu0 %v2388_v0  ;;  %1917 = vmatprep.subr.mxu1 %v2388_v0  ;;  %p2303_p8 = pnand %p2302_p5, %p2880_p1  ;;  %s2305_s11 = sshll.u32 %s2393_s23, 4  ;;  %s2306_s11 = int_to_ptr.vmem [resolvable:$false] %s2305_s11 }
  0xc3   : > { %1907 = vmatpush3.msra.mxu0 %v453_v7  ;;  %1918 = vmatpush3.msra.mxu1 %v531_v8  ;;  %v1326_v8 = vld [vmem:[#allocation13 + $0x10] sm:$0xff]  ;;  %s2307_s25 = scalar_lea.vmem %s2306_s11, 256  ;;  %p2308_p11 = scmp.lt.s32.totalorder %s1665_s15, %s2306_s11 }
  0xc4   : > { %1909 = vmatmul.mubr.msk.f32.vlgmr.msra.gmra.mxu0 %vm457_vm1, %v450_v9  ;;  %1920 = vmatmul.mubr.msk.f32.vlgmr.msra.gmra.mxu1 %vm457_vm1, %v451_v10  ;;  %p2304_p10 = pneg %p2303_p8  ;;  %p2309_p0 = scmp.lt.s32.totalorder %s2307_s25, %s2301_s18 }
  0xc5   : > { %1922 = vmatprep.subr.mxu0 %v2388_v0  ;;  %1930 = vmatprep.mubr.msk.f32.mxu0 %vm2389_vm0, %v2388_v0 }
  0xc6   : > { %1923 = vmatpush3.msra.mxu0 %v611_v11  ;;  %1933 = vmatprep.subr.mxu1 %v2388_v0  ;;  %p2310_p4 = por %p2309_p0, %p2308_p11 }
  0xc7   : > { %1924 = vmatprep.subr.mxu0 %v2388_v0  ;;  %1935 = vmatprep.mubr.msk.f32.mxu1 %vm2389_vm0, %v2388_v0 }
  0xc8   : > { %1925 = vmatpush3.msra.mxu0 %v610_v12  ;;  %p2311_p7 = pnand %p2310_p4, %p2304_p10 }
  0xc9   : > { %1926 = vmatprep.subr.mxu0 %v2388_v0 }
  0xca   : > { %1927 = vmatpush3.msra.mxu0 %v609_v13 }
  0xcb   : > { %1928 = vmatprep.subr.mxu0 %v2388_v0 }
  0xcc   : > { %1929 = vmatpush3.msra.mxu0 %v608_v14 }
  0xcd   : > { %1931 = vmatmul.mubr.msk.f32.vlgmr.msra.gmra.mxu0 %vm457_vm1, %v452_v15  ;;  %1943 = vmatprep.subr.mxu0 %v2388_v0 }
  0xce   : > { %1945 = vmatprep.mubr.msk.f32.mxu0 %vm2389_vm0, %v2388_v0 }
 0x184   : > { %v527_v16 = vpop.f32.mrf.mxu0  ;;  %v2709_v17 = vpop.f32.mrf.mxu1 }
 0x185   : > { %v685_v18 = vmul.f32 0.35355338, %v527_v16  ;;  %850 = vrot.lane.b32.xlu0 %v2709_v17, %s2390_s13  ;;  %1934 = vmatpush3.xpose.msk.msra.mxu1 %vm686_vm2, %v2709_v17 }
 0x186   : > { %v1910_v19 = vpop.f32.mrf.mxu0  ;;  %v1921_v20 = vpop.f32.mrf.mxu1  ;;  %1938 = vmatprep.subr.mxu1 %v2388_v0 }
 0x188   : > { %1936 = vmatmul.mubr.msk.f32.vlgmr.msra.gmra.mxu1 %vm686_vm2, %v685_v18 }
 0x189   : > { %848 = vrot.lane.b32.xlu0 %v685_v18, %s2390_s13  ;;  %1940 = vmatprep.mubr.msk.f32.mxu1 %vm2389_vm0, %v2388_v0 }
 0x18d   : > { %v2718_v21 = vpop.f32.mrf.mxu0 }
 0x18e   : > { %936 = vrot.lane.b32.xlu0 %v2718_v21, %s2390_s13  ;;  %1939 = vmatpush3.msra.mxu1 %v2718_v21 }
 0x18f   : > { %v1932_v22 = vpop.f32.mrf.mxu0  ;;  %1948 = vmatprep.subr.mxu1 %v2388_v0 }
 0x192   : > { %1163 = vrot.lane.b32.xlu0 %v2709_v17, %s2391_s10 }
 0x1f7   : > { %v851_v23 = vpop.permute.xlu0 %850 }
 0x1f8   : > { %1944 = vmatpush3.xpose.msk.msra.mxu0 %vm686_vm2, %v851_v23  ;;  %v1566_v23 = vld [vmem:[#allocation13 + $0x18] sm:$0xff] }
 0x1f9   : > { %1953 = vmatprep.subr.mxu0 %v2388_v0 }
 0x1fb   : > { %v849_v24 = vpop.permute.xlu0 %848 }
 0x1fc   : > { %1946 = vmatmul.mubr.msk.f32.vlgmr.msra.gmra.mxu0 %vm686_vm2, %v849_v24 }
 0x1fd   : > { %1955 = vmatprep.mubr.msk.f32.mxu0 %vm2389_vm0, %v2388_v0  ;;  %1954 = vmatpush3.msra.mxu0 %v1014_v43 }
 0x1fe   : > { %1963 = vmatprep.subr.mxu0 %v2388_v0 }
 0x200   : > { %v937_v35 = vpop.permute.xlu0 %936 }
 0x204   : > { %v1164_v44 = vpop.permute.xlu0 %1163 }
 0x248   : > { %v759_v25 = vpop.f32.mrf.mxu1 }
 0x249   : > { %v763_v26 = vsel %vm686_vm2, %v759_v25, -inf }
 0x24a   : > { %764 = vmax.xlane.f32.xlu1 %v763_v26  ;;  %v1937_v27 = vpop.f32.mrf.mxu1 }
 0x2bc   : > { %v922_v28 = vpop.f32.mrf.mxu0 }
 0x2bd   : > { %v926_v29 = vsel %vm686_vm2, %v922_v28, -inf }
 0x2be   : > { %927 = vmax.xlane.f32.xlu1 %v926_v29  ;;  %v1947_v30 = vpop.f32.mrf.mxu0 }
 0x2d3   : > { %v765_v31 = vpop.xlane.xlu1 %764 }
 0x2d4   : > { %v766_v32 = vsub.f32 %v759_v25, %v765_v31 }
 0x2d6   : > { %v767_v33 = vmul.f32 1.442695, %v766_v32 }
 0x2d8   : > { %2097 = vpow2.f32 %v767_v33  ;;  %v1856_v33 = vld [vmem:[%s2828_s7] ss:$0 sm:$0xff] }
 0x2e5   : > { %v2098_v34 = vpop.eup %2097 }
 0x2e6   : > { %1941 = vmatmul.mubr.msk.f32.vlgmr.msra.gmra.mxu1 %vm686_vm2, %v2098_v34  ;;  %v769_v36 = vsel %vm686_vm2, %v2098_v34, 0.0 }
 0x2e7   : > { %770 = vadd.xlane.f32.xlu0 %v769_v36  ;;  %1949 = vmatpush3.msra.mxu1 %v937_v35 }
 0x2e8   : > { %1950 = vmatprep.mubr.msk.f32.mxu1 %vm2389_vm0, %v2388_v0  ;;  %1958 = vmatprep.subr.mxu1 %v2388_v0 }
 0x2fd   : > { %1248 = vrot.lane.b32.xlu0 %v2718_v21, %s2391_s10 }
 0x301   : > { %1401 = vrot.lane.b32.xlu0 %v685_v18, %s2392_s19 }
 0x347   : > { %v928_v37 = vpop.xlane.xlu1 %927 }
 0x348   : > { %v929_v38 = vsub.f32 %v922_v28, %v928_v37 }
 0x34a   : > { %v930_v39 = vmul.f32 1.442695, %v929_v38 }
 0x34c   : > { %2099 = vpow2.f32 %v930_v39 }
 0x359   : > { %v2100_v41 = vpop.eup %2099 }
 0x35a   : > { %1951 = vmatmul.mubr.msk.f32.vlgmr.msra.gmra.mxu1 %vm686_vm2, %v2100_v41  ;;  %v932_v42 = vsel %vm686_vm2, %v2100_v41, 0.0 }
 0x35b   : > { %933 = vadd.xlane.f32.xlu1 %v932_v42  ;;  %1959 = vmatpush3.msra.mxu1 %v847_v40 }
 0x35c   : > { %1960 = vmatprep.mubr.msk.f32.mxu1 %vm2389_vm0, %v2388_v0  ;;  %1968 = vmatprep.subr.mxu1 %v2388_v0 }
 0x36c   : > { %1161 = vrot.lane.b32.xlu1 %v685_v18, %s2391_s10 }
 0x370   : > { %v771_v45 = vpop.xlane.xlu0 %770 }
 0x371   : > { %2101 = vrcp.f32 %v771_v45 }
 0x374   : > { %v1249_v50 = vpop.permute.xlu0 %1248 }
 0x378   : > { %v1402_v7 = vpop.permute.xlu0 %1401 }
 0x37e   : > { %v2102_v46 = vpop.eup %2101 }
 0x3a6   : > { %v841_v47 = vpop.f32.mrf.mxu1 }
 0x3a7   : > { %v846_v48 = vmul.f32 %v2102_v46, %v841_v47 }
 0x3a8   : > { %v1942_v49 = vpop.f32.mrf.mxu1 }
 0x3a9   : > { %1961 = vmatmul.mubr.msk.f32.vlgmr.msra.gmra.mxu1 %vm686_vm2, %v846_v48 }
 0x3aa   : > { %1969 = vmatpush3.msra.mxu1 %v1249_v50  ;;  %1970 = vmatprep.mubr.msk.f32.mxu1 %vm2389_vm0, %v2388_v0 }
 0x3ab   : > { %1978 = vmatprep.subr.mxu1 %v2388_v0 }
 0x3e4   : > { %v934_v51 = vpop.xlane.xlu1 %933 }
 0x3e5   : > { %2103 = vrcp.f32 %v934_v51 }
 0x3e8   : > { %v1162_v56 = vpop.permute.xlu1 %1161 }
 0x3f2   : > { %v2104_v52 = vpop.eup %2103 }
 0x41a   : > { %v1008_v53 = vpop.f32.mrf.mxu1 }
 0x41b   : > { %v1013_v54 = vmul.f32 %v2104_v52, %v1008_v53 }
 0x41c   : > { %v1952_v55 = vpop.f32.mrf.mxu1 }
 0x41d   : > { %1956 = vmatmul.mubr.msk.f32.vlgmr.msra.gmra.mxu0 %vm686_vm2, %v1013_v54 }
 0x41e   : > { %1964 = vmatpush3.xpose.msk.msra.mxu0 %vm686_vm2, %v1164_v44  ;;  %1965 = vmatprep.mubr.msk.f32.mxu0 %vm2389_vm0, %v2388_v0 }
 0x41f   : > { %1973 = vmatprep.subr.mxu0 %v2388_v0 }
 0x421   : > { %1966 = vmatmul.mubr.msk.f32.vlgmr.msra.gmra.mxu0 %vm686_vm2, %v1162_v56 }
 0x422   : > { %1975 = vmatprep.mubr.msk.f32.mxu0 %vm2389_vm0, %v2388_v0  ;;  %1974 = vmatpush3.msra.mxu0 %v1326_v8 }
 0x423   : > { %1983 = vmatprep.subr.mxu0 %v2388_v0 }
 0x469   : > { %v1157_v57 = vpop.f32.mrf.mxu1 }
 0x46b   : > { %v1962_v58 = vpop.f32.mrf.mxu1 }
 0x4dd   : > { %v1084_v59 = vpop.f32.mrf.mxu0 }
 0x4de   : > { %v1158_v24 = vadd.f32 %v1157_v57, %v1084_v59 }
 0x4df   : > { %v1957_v60 = vpop.f32.mrf.mxu0 }
 0x4e1   : > { %v1235_v61 = vpop.f32.mrf.mxu0 }
 0x4e2   : > { %v1239_v62 = vsel %vm686_vm2, %v1235_v61, -inf }
 0x4e3   : > { %1240 = vmax.xlane.f32.xlu1 %v1239_v62  ;;  %v1967_v63 = vpop.f32.mrf.mxu0 }
 0x4f4   : > { %1403 = vrot.lane.b32.xlu1 %v2709_v17, %s2392_s19 }
 0x56c   : > { %v1241_v1 = vpop.xlane.xlu1 %1240 }
 0x56d   : > { %v1242_v2 = vsub.f32 %v1235_v61, %v1241_v1 }
 0x56f   : > { %v1243_v3 = vmul.f32 1.442695, %v1242_v2 }
 0x570   : > { %v1404_v5 = vpop.permute.xlu1 %1403 }
 0x571   : > { %2105 = vpow2.f32 %v1243_v3 }
 0x57e   : > { %v2106_v4 = vpop.eup %2105 }
 0x57f   : > { %1971 = vmatmul.mubr.msk.f32.vlgmr.msra.gmra.mxu1 %vm686_vm2, %v2106_v4  ;;  %v1245_v6 = vsel %vm686_vm2, %v2106_v4, 0.0 }
 0x580   : > { %1979 = vmatpush3.xpose.msk.msra.mxu1 %vm686_vm2, %v1404_v5  ;;  %1246 = vadd.xlane.f32.xlu0 %v1245_v6 }
 0x581   : > { %1980 = vmatprep.mubr.msk.f32.mxu1 %vm2389_vm0, %v2388_v0  ;;  %1988 = vmatprep.subr.mxu1 %v2388_v0 }
 0x583   : > { %1981 = vmatmul.mubr.msk.f32.vlgmr.msra.gmra.mxu1 %vm686_vm2, %v1402_v7 }
 0x584   : > { %1990 = vmatprep.mubr.msk.f32.mxu1 %vm2389_vm0, %v2388_v0  ;;  %1989 = vmatpush3.msra.mxu1 %v1566_v23 }
 0x596   : > { %1488 = vrot.lane.b32.xlu0 %v2718_v21, %s2392_s19 }
 0x609   : > { %v1247_v9 = vpop.xlane.xlu0 %1246 }
 0x60a   : > { %2107 = vrcp.f32 %v1247_v9 }
 0x60d   : > { %v1489_v14 = vpop.permute.xlu0 %1488 }
 0x617   : > { %v2108_v10 = vpop.eup %2107 }
 0x63f   : > { %v1320_v11 = vpop.f32.mrf.mxu1 }
 0x640   : > { %v1325_v12 = vmul.f32 %v2108_v10, %v1320_v11 }
 0x641   : > { %v1972_v13 = vpop.f32.mrf.mxu1 }
 0x642   : > { %1976 = vmatmul.mubr.msk.f32.vlgmr.msra.gmra.mxu0 %vm686_vm2, %v1325_v12 }
 0x643   : > { %1984 = vmatpush3.msra.mxu0 %v1489_v14  ;;  %v1475_v15 = vpop.f32.mrf.mxu1  ;;  %1985 = vmatprep.mubr.msk.f32.mxu0 %vm2389_vm0, %v2388_v0 }
 0x644   : > { %v1479_v16 = vsel %vm686_vm2, %v1475_v15, -inf }
 0x645   : > { %1480 = vmax.xlane.f32.xlu1 %v1479_v16  ;;  %v1982_v17 = vpop.f32.mrf.mxu1 }
 0x6ce   : > { %v1481_v18 = vpop.xlane.xlu1 %1480 }
 0x6cf   : > { %v1482_v19 = vsub.f32 %v1475_v15, %v1481_v18 }
 0x6d1   : > { %v1483_v20 = vmul.f32 1.442695, %v1482_v19 }
 0x6d3   : > { %2109 = vpow2.f32 %v1483_v20 }
 0x6e0   : > { %v2110_v21 = vpop.eup %2109 }
 0x6e1   : > { %1986 = vmatmul.mubr.msk.f32.vlgmr.msra.gmra.mxu0 %vm686_vm2, %v2110_v21  ;;  %v1485_v22 = vsel %vm686_vm2, %v2110_v21, 0.0 }
 0x6e2   : > { %1486 = vadd.xlane.f32.xlu1 %v1485_v22 }
 0x702   : > { %v1396_v0 = vpop.f32.mrf.mxu0 }
 0x703   : > { %v1400_v25 = vadd.f32 %v1396_v0, %v1158_v24 }
 0x704   : > { %v1977_v26 = vpop.f32.mrf.mxu0 }
 0x76b   : > { %v1487_v27 = vpop.xlane.xlu1 %1486 }
 0x76c   : > { %2111 = vrcp.f32 %v1487_v27 }
 0x779   : > { %v2112_v28 = vpop.eup %2111 }
 0x7a1   : > { %v1560_v29 = vpop.f32.mrf.mxu0 }
 0x7a2   : > { %v1565_v30 = vmul.f32 %v2112_v28, %v1560_v29 }
 0x7a3   : > { %v1987_v31 = vpop.f32.mrf.mxu0 }
 0x7a4   : > { %1991 = vmatmul.mubr.msk.f32.vlgmr.msra.gmra.mxu1 %vm686_vm2, %v1565_v30 }
 0x864   : > { %v1636_v32 = vpop.f32.mrf.mxu1 }
 0x865   : > { %v1640_v34 = vadd.f32 %v1636_v32, %v1400_v25 }
 0x866   : > { %v1992_v35 = vpop.f32.mrf.mxu1 }
 0x867   : > { %v1648_v36 = vadd.f32 %v1856_v33, %v1640_v34 }
 0x869   : > { %1649 = vst.msk [vmem:[%s449_s30] sm:$0xff] %vm457_vm1, %v1648_v36 }
 0x86a   : > { %2314 = shalt.err (!%p2311_p7)
}
 0x86b   : > { %s2315_s1 = scalar_lea.hbm %s1662_s21, 128  ;;  %s2319_s12 = scalar_lea.hbm %s2829_s8, 256 }
 0x86c   : > { %p2316_p3 = scmp.ne.s32.totalorder %s1662_s21, %s2315_s1  ;;  %p2320_p6 = scmp.lt.s32.totalorder %s1662_s21, %s2829_s8 }
 0x86d   : > { %p2321_p9 = scmp.lt.s32.totalorder %s2319_s12, %s2315_s1 }
 0x86e   : > { %p2317_p12 = pnand %p2316_p3, %p2880_p1 }
 0x86f   : > { %p2322_p2 = por %p2321_p9, %p2320_p6 }
 0x870   : > { %p2318_p13 = pneg %p2317_p12 }
 0x872   : > { %p2323_p5 = pnand %p2322_p2, %p2318_p13 }
 0x874   : > { %2326 = shalt.err (!%p2323_p5)
}
 0x875   : > { %2015 = dma.vmem_to_hbm [thread:$0]  (%p2880_p1), %s1665_s15, 128, %s1662_s21, %s1651_s14  }
 0x876 PF: > { %s2881_s13 = sld [smem:[#allocation23_spill]]  ;;  %s1676_s19 = sand.u32 1, %s2365_s27  }
 0x877   : > { %s2882_s10 = sld [smem:[#allocation20_spill]]  ;;  %s1677_s9 = scalar_lea.sflag [#allocation4], %s1676_s19 }
 0x87c   : > { %p2883_p8 = scmp.ne.s32.totalorder %s2881_s13, 0 }
 0x87d   : > { %p2884_p10 = scmp.ge.s32.totalorder %s2882_s10, 2 }
 0x87f   : > { %p2041_p11 = pnand %p2884_p10, %p2883_p8 }
 0x881   : > { %p2042_p0 = pneg %p2041_p11 }
 0x883   : > { %2360 = dma.done.wait (%p2042_p0), %s1677_s9, 128  }
 0x884   : > { %2362 = vsyncadd (%p2042_p0), %s1677_s9, 4294967168  ;;  %s2885_s30 = sld [smem:[#allocation21_spill]]  ;;  %s2887_s27 = smov %s2369_s28 }
 0x885   : > { %s2886_s24 = sld [smem:[#allocation22_spill]]  ;;  %s2888_s28 = smov %s2373_s29 }
 0x88a   : > { %p26_p4 = scmp.ge.s32.totalorder %s2885_s30, 4  }
 0x88b   : > { %s2889_s29 = smov %s2886_s24 }
 0x88c   :  { %28 = sbr.rel (!%p26_p4) target bundleno = 14 (0xe), region = 137 }
 0x891   :  { %1682 = vsyncpa [#allocation3], 1 }
 0x892   :  { %1684 = vsyncpa [#allocation3 + $0x1], 1 }
 0x893   :  { %1685 = vsyncpa [#allocation6], 1 }
 0x894   :  { %1687 = vsyncpa [#allocation6 + $0x1], 1 }
 0x895   :  { %1688 = vsyncpa [#allocation9], 1 }
 0x896   :  { %1689 = vsyncpa [#allocation12], 1 }
 0x897   :  { %1690 = vsyncpa [#allocation4], 1 }
 0x898   :  { %1692 = vsyncpa [#allocation4 + $0x1], 1 }

</bundles_post_ra>
